<compile_context>
chip_gen: v6e
topology: v6e:2x2x1
jax: 0.10.0
libtpu: 0.0.40
codegen_flags: <defaults>
</compile_context>

<pallas_src>
import functools

import jax
import jax.numpy as jnp
from jax.experimental import pallas as pl
from jax.experimental.pallas import tpu as pltpu

LANE = 128
SUBLANE = 8

# Largest padded node count for which the whole forward runs as one fused kernel
# (A_hat bf16 at 1024^2 is 2 MiB; the total working set stays far below the default
#  scoped VMEM on v5e / v6e / v7x).
FUSE_MAX_NODES = 1024

# Streaming tile for the tiled path.  512 reaches ~85% of the HBM roofline while keeping
# A_hat padding overhead bounded.  On v5e/v6e (128 MiB VMEM) this could be raised to
# 1024-2048 together with vmem_limit_bytes; on v7x (64 MiB per TC) cap around 1024.
MAX_TILE = 512


def _round_up(x, m):
    return ((x + m - 1) // m) * m


def _plan_tiles(n_nodes):
    """Pick (padded_nodes, tm, tk) for the tiled path."""
    t = MAX_TILE
    while t > LANE and t // 2 >= _round_up(n_nodes, LANE):
        t //= 2
    np_ = _round_up(max(n_nodes, LANE), t)   # pad NP to a multiple of the tile
    tk = t
    tm = t
    # Guarantee >= 2 parallel m-tiles so both TensorCores get work on v7x megacore.
    while tm > LANE and np_ // tm < 2:
        tm //= 2
    return np_, tm, tk


def _agg_vmem_limit(tm, tk, np_, f_out):
    a_bytes = 2 * tm * tk * 2        # double-buffered bf16 A_hat tile
    xw_bytes = 2 * np_ * f_out * 2   # VMEM-resident XW operand (budget 2 buffers)
    acc_bytes = tm * f_out * 4       # f32 accumulator scratch
    out_bytes = 2 * tm * f_out * 2   # double-buffered bf16 output tile
    est = a_bytes + xw_bytes + acc_bytes + out_bytes
    # Generous headroom, never above v7x's 64 MiB physical VMEM per TensorCore.
    return int(min(64 * 1024 * 1024, max(32 * 1024 * 1024, 2 * est)))


# ---------------------------------------------------------------------------
# Fused whole-forward kernel (small graphs: everything VMEM resident, 1 launch)
# ---------------------------------------------------------------------------

def _fused_forward_kernel(a_ref, p_ref, xw1_ref, b1_ref, w2_ref, b2_ref, w3_ref,
                          wl_ref, bf_ref, o_ref):
    """logits = (P@A) @ (relu(A@relu(A@XW1+b1)@W2+b2) @ W3) @ W_lin + (b3@W_lin + b_lin).

    The b3 term is pre-folded into bf_ref by the wrapper; all matmuls use bf16 MXU inputs
    with f32 accumulation.
    """
    a = a_ref[...]                                                           # bf16 (np, np)
    h1 = jnp.maximum(
        jnp.dot(a, xw1_ref[...], preferred_element_type=jnp.float32) + b1_ref[...],
        0.0).astype(jnp.bfloat16)
    xw2 = jnp.dot(h1, w2_ref[...], preferred_element_type=jnp.float32).astype(jnp.bfloat16)
    h2 = jnp.maximum(
        jnp.dot(a, xw2, preferred_element_type=jnp.float32) + b2_ref[...],
        0.0).astype(jnp.bfloat16)
    xw3 = jnp.dot(h2, w3_ref[...], preferred_element_type=jnp.float32).astype(jnp.bfloat16)
    # Folded layer 3 + global_mean_pool:  pooled = (P @ A) @ XW3  (b3 lives in bf_ref).
    pa = jnp.dot(p_ref[...], a, preferred_element_type=jnp.float32).astype(jnp.bfloat16)
    pooled = jnp.dot(pa, xw3, preferred_element_type=jnp.float32)
    # TODO(synk): F.dropout(p=0.7) only acts in training mode; eval forward is identity.
    out = jnp.dot(pooled, wl_ref[...], preferred_element_type=jnp.float32) + bf_ref[...]
    o_ref[...] = out.astype(o_ref.dtype)


def fused_forward(a_hat, pool_mat, xw1, b1, w2, b2, w3, w_lin, b_fold):
    gp = pool_mat.shape[0]
    cp = w_lin.shape[1]
    return pl.pallas_call(
        _fused_forward_kernel,
        out_shape=jax.ShapeDtypeStruct((gp, cp), jnp.float32),
    )(a_hat, pool_mat, xw1, b1, w2, b2, w3, w_lin, b_fold)


# ---------------------------------------------------------------------------
# Tiled path (large graphs)
# ---------------------------------------------------------------------------

def _xw_kernel(h_ref, w_ref, o_ref):
    o_ref[...] = jnp.dot(h_ref[...], w_ref[...],
                         preferred_element_type=jnp.float32).astype(o_ref.dtype)


def feature_transform(h, w, tm):
    """XW = H @ W, hoisted out of the aggregation loop (one pass over H)."""
    np_, f_in = h.shape
    f_out = w.shape[1]
    return pl.pallas_call(
        _xw_kernel,
        out_shape=jax.ShapeDtypeStruct((np_, f_out), jnp.bfloat16),
        grid=(np_ // tm,),
        in_specs=[pl.BlockSpec((tm, f_in), lambda i: (i, 0)),
                  pl.BlockSpec((f_in, f_out), lambda i: (0, 0))],
        out_specs=pl.BlockSpec((tm, f_out), lambda i: (i, 0)),
        compiler_params=pltpu.CompilerParams(dimension_semantics=("parallel",)),
    )(h, w)


def _agg_kernel(a_ref, xw_ref, b_ref, o_ref, acc_ref, *, apply_relu, tk):
    """One (m_tile, k_tile) step of  out = A_hat @ XW + b  (+ optional ReLU).

    XW is fully VMEM resident (constant index_map); only A_hat tiles stream from HBM.
    Padded node rows end up as relu(b) / b, which is harmless because A_hat / P have zero
    columns for padded nodes.
    """
    k = pl.program_id(1)

    @pl.when(k == 0)
    def _():
        acc_ref[...] = jnp.zeros_like(acc_ref)

    start = pl.multiple_of(k * tk, tk)
    acc_ref[...] += jnp.dot(a_ref[...], xw_ref[pl.ds(start, tk), :],
                            preferred_element_type=jnp.float32)

    @pl.when(k == pl.num_programs(1) - 1)
    def _():
        out = acc_ref[...] + b_ref[...]
        if apply_relu:
            out = jnp.maximum(out, 0.0)
        o_ref[...] = out.astype(o_ref.dtype)


def gcn_aggregate(a_hat, xw, bias, *, tm, tk, apply_relu):
    np_ = a_hat.shape[0]
    f_out = xw.shape[1]
    kernel = functools.partial(_agg_kernel, apply_relu=apply_relu, tk=tk)
    return pl.pallas_call(
        kernel,
        out_shape=jax.ShapeDtypeStruct((np_, f_out), jnp.bfloat16),
        grid=(np_ // tm, np_ // tk),
        in_specs=[
            pl.BlockSpec((tm, tk), lambda i, k: (i, k)),       # A_hat tile (streamed)
            pl.BlockSpec((np_, f_out), lambda i, k: (0, 0)),   # XW: VMEM resident
            pl.BlockSpec((1, f_out), lambda i, k: (0, 0)),     # bias (resident)
        ],
        out_specs=pl.BlockSpec((tm, f_out), lambda i, k: (i, 0)),
        scratch_shapes=[pltpu.VMEM((tm, f_out), jnp.float32)],
        compiler_params=pltpu.CompilerParams(
            dimension_semantics=("parallel", "arbitrary"),
            vmem_limit_bytes=_agg_vmem_limit(tm, tk, np_, f_out)),
    )(a_hat, xw, bias)


def _pool_lin_kernel(pa_ref, xw_ref, wl_ref, bf_ref, o_ref, acc_ref):
    """Folded layer 3 + mean-pool + Linear: acc = (P@A) @ XW3 over node tiles, then
    logits = acc @ W_lin + (b3 @ W_lin + b_lin) in the epilogue."""
    k = pl.program_id(0)

    @pl.when(k == 0)
    def _():
        acc_ref[...] = jnp.zeros_like(acc_ref)

    acc_ref[...] += jnp.dot(pa_ref[...], xw_ref[...],
                            preferred_element_type=jnp.float32)

    @pl.when(k == pl.num_programs(0) - 1)
    def _():
        out = jnp.dot(acc_ref[...], wl_ref[...],
                      preferred_element_type=jnp.float32) + bf_ref[...]
        o_ref[...] = out.astype(o_ref.dtype)


def pool_linear_folded(pa, xw3, w_lin, b_fold, tk):
    gp, np_ = pa.shape
    f = xw3.shape[1]
    c = w_lin.shape[1]
    return pl.pallas_call(
        _pool_lin_kernel,
        out_shape=jax.ShapeDtypeStruct((gp, c), jnp.float32),
        grid=(np_ // tk,),
        in_specs=[
            pl.BlockSpec((gp, tk), lambda k: (0, k)),    # (P @ A_hat) tile
            pl.BlockSpec((tk, f), lambda k: (k, 0)),     # XW3 tile
            pl.BlockSpec((f, c), lambda k: (0, 0)),      # W_lin (resident)
            pl.BlockSpec((1, c), lambda k: (0, 0)),      # b3 @ W_lin + b_lin (resident)
        ],
        out_specs=pl.BlockSpec((gp, c), lambda k: (0, 0)),
        scratch_shapes=[pltpu.VMEM((gp, f), jnp.float32)],
        compiler_params=pltpu.CompilerParams(dimension_semantics=("arbitrary",)),
    )(pa, xw3, w_lin, b_fold)


# ---------------------------------------------------------------------------
# Glue (plain JAX): densify graph structure with zero padding
# ---------------------------------------------------------------------------

def build_normalized_adjacency(edge_index, edge_attr, num_nodes, padded_nodes):
    """A_hat = D^{-1/2} (A + I) D^{-1/2}, zero-padded to [NP, NP], bf16.

    Single scatter directly into the padded layout (edges + self loops together),
    fused D^{-1/2} scaling, one bf16 cast at the end.
    """
    # TODO(synk): for large graphs replace this dense O(NP^2) build with a CSR /
    # scalar-prefetch block-sparse path so only nonzero A_hat blocks are streamed.
    src = edge_index[0]
    dst = edge_index[1]
    ew = edge_attr.reshape(-1).astype(jnp.float32)
    loop = jnp.arange(num_nodes, dtype=edge_index.dtype)
    rows = jnp.concatenate([dst, loop])
    cols = jnp.concatenate([src, loop])
    vals = jnp.concatenate([ew, jnp.ones((num_nodes,), jnp.float32)])
    adj = jnp.zeros((padded_nodes, padded_nodes), jnp.float32).at[rows, cols].add(vals)
    deg = jnp.sum(adj, axis=1)
    dinv = jnp.where(deg > 0, jax.lax.rsqrt(deg), 0.0)
    return ((dinv[:, None] * adj) * dinv[None, :]).astype(jnp.bfloat16)


def build_pool_matrix(batch, num_graphs, num_nodes, padded_graphs, padded_nodes):
    """P[g, n] = 1/count_g if batch[n] == g (mean pool), zero-padded, bf16."""
    onehot = (batch[None, :] == jnp.arange(num_graphs)[:, None]).astype(jnp.float32)
    counts = jnp.maximum(jnp.sum(onehot, axis=1, keepdims=True), 1.0)
    p = onehot / counts
    out = jnp.zeros((padded_graphs, padded_nodes), jnp.float32)
    return out.at[:num_graphs, :num_nodes].set(p).astype(jnp.bfloat16)


def _pad_matrix(w, rows, cols, dtype):
    out = jnp.zeros((rows, cols), dtype)
    return out.at[: w.shape[0], : w.shape[1]].set(w.astype(dtype))


def _pad_bias(b, cols):
    out = jnp.zeros((1, cols), jnp.float32)
    return out.at[0, : b.shape[0]].set(b.astype(jnp.float32))


# ---------------------------------------------------------------------------
# Full forward pass (eval mode: dropout p=0.7 is identity)
# ---------------------------------------------------------------------------

def gcn_forward(params, x, edge_index, edge_attr, batch, *, num_graphs):
    n, _ = x.shape
    hidden = params["w1"].shape[1]
    num_classes = params["w_lin"].shape[1]

    hp = _round_up(max(hidden, LANE), LANE)           # padded hidden (lane-dense)
    cp = _round_up(max(num_classes, LANE), LANE)      # padded classes (lane-dense)
    gp = _round_up(max(num_graphs, SUBLANE), SUBLANE)

    use_fused = n <= FUSE_MAX_NODES
    if use_fused:
        np_ = _round_up(max(n, LANE), LANE)
        tm = tk = np_  # unused in the fused path
    else:
        np_, tm, tk = _plan_tiles(n)

    a_hat = build_normalized_adjacency(edge_index, edge_attr, n, np_)
    pool_mat = build_pool_matrix(batch, num_graphs, n, gp, np_)

    # Hoisted layer-1 feature transform XW1 = X @ W1 (a rank-1 outer product when
    # f_in == 1) -- computed once here, never recomputed inside the aggregation loop.
    xw1 = jnp.zeros((np_, hp), jnp.bfloat16).at[:n, :hidden].set(
        jnp.dot(x.astype(jnp.float32),
                params["w1"].astype(jnp.float32)).astype(jnp.bfloat16))

    b1 = _pad_bias(params["b1"], hp)
    w2 = _pad_matrix(params["w2"], hp, hp, jnp.bfloat16)
    b2 = _pad_bias(params["b2"], hp)
    w3 = _pad_matrix(params["w3"], hp, hp, jnp.bfloat16)
    b3 = _pad_bias(params["b3"], hp)
    w_lin = _pad_matrix(params["w_lin"], hp, cp, jnp.float32)
    b_lin = _pad_bias(params["b_lin"], cp)
    # Fold the layer-3 bias through mean-pool + Linear:  b3 @ W_lin + b_lin.
    b_fold = jnp.dot(b3, w_lin, preferred_element_type=jnp.float32) + b_lin

    if use_fused:
        # Whole forward in one kernel launch; A_hat, weights and activations stay in VMEM.
        logits = fused_forward(a_hat, pool_mat, xw1, b1, w2, b2, w3, w_lin, b_fold)
    else:
        h1 = gcn_aggregate(a_hat, xw1, b1, tm=tm, tk=tk, apply_relu=True)
        xw2 = feature_transform(h1, w2, tm)
        h2 = gcn_aggregate(a_hat, xw2, b2, tm=tm, tk=tk, apply_relu=True)
        xw3 = feature_transform(h2, w3, tm)
        # Folded layer 3 + global_mean_pool: PA = P @ A_hat is one cheap pass over A_hat
        # and replaces the full NPxNPx128 layer-3 aggregation + f32 H3 round trip.
        pa = jnp.dot(pool_mat, a_hat,
                     preferred_element_type=jnp.float32).astype(jnp.bfloat16)
        logits = pool_linear_folded(pa, xw3, w_lin, b_fold, tk)
    # TODO(synk): F.dropout(p=0.7) only acts in training mode; eval forward is identity.
    return logits[:num_graphs, :num_classes]


# ---------------------------------------------------------------------------
# Pure-JAX float32 reference (matches the PyTorch GCN forward in eval mode)
# ---------------------------------------------------------------------------

def gcn_reference(params, x, edge_index, edge_attr, batch, num_graphs):
    n = x.shape[0]
    src, dst = edge_index[0], edge_index[1]
    adj = jnp.zeros((n, n), jnp.float32).at[dst, src].add(
        edge_attr.reshape(-1).astype(jnp.float32))
    adj = adj + jnp.eye(n, dtype=jnp.float32)
    deg = jnp.sum(adj, axis=1)
    dinv = jnp.where(deg > 0, jax.lax.rsqrt(deg), 0.0)
    a_hat = dinv[:, None] * adj * dinv[None, :]
    h = jnp.maximum(a_hat @ (x @ params["w1"]) + params["b1"], 0.0)
    h = jnp.maximum(a_hat @ (h @ params["w2"]) + params["b2"], 0.0)
    h = a_hat @ (h @ params["w3"]) + params["b3"]
    onehot = (batch[None, :] == jnp.arange(num_graphs)[:, None]).astype(jnp.float32)
    pooled = (onehot @ h) / jnp.maximum(jnp.sum(onehot, axis=1, keepdims=True), 1.0)
    return pooled @ params["w_lin"] + params["b_lin"]


# ---------------------------------------------------------------------------
# Main
# ---------------------------------------------------------------------------

def _ring_graph_batch(num_graphs, nodes_per_graph):
    offs = jnp.arange(num_graphs, dtype=jnp.int32)[:, None] * nodes_per_graph
    i = jnp.arange(nodes_per_graph, dtype=jnp.int32)[None, :]
    j = (i + 1) % nodes_per_graph
    src = (offs + i).reshape(-1)
    dst = (offs + j).reshape(-1)
    edge_index = jnp.stack([jnp.concatenate([src, dst]),
                            jnp.concatenate([dst, src])]).astype(jnp.int32)
    batch = jnp.repeat(jnp.arange(num_graphs, dtype=jnp.int32), nodes_per_graph)
    return edge_index, batch


def _run_case(key, *, num_graphs, nodes_per_graph, hidden, num_classes, num_node_features):
    n = num_graphs * nodes_per_graph
    edge_index, batch = _ring_graph_batch(num_graphs, nodes_per_graph)
    e = edge_index.shape[1]

    keys = jax.random.split(key, 10)
    k_x, k_e, kw1, kw2, kw3, kwl, kb1, kb2, kb3, kbl = keys
    x = jax.random.normal(k_x, (n, num_node_features), dtype=jnp.float32)
    edge_attr = jax.random.uniform(k_e, (e, 1), dtype=jnp.float32, minval=0.1, maxval=1.0)

    def glorot(k, shape):
        lim = (6.0 / (shape[0] + shape[1])) ** 0.5
        return jax.random.uniform(k, shape, jnp.float32, -lim, lim)

    params = {
        "w1": glorot(kw1, (num_node_features, hidden)),
        "b1": 0.1 * jax.random.normal(kb1, (hidden,), jnp.float32),
        "w2": glorot(kw2, (hidden, hidden)),
        "b2": 0.1 * jax.random.normal(kb2, (hidden,), jnp.float32),
        "w3": glorot(kw3, (hidden, hidden)),
        "b3": 0.1 * jax.random.normal(kb3, (hidden,), jnp.float32),
        "w_lin": glorot(kwl, (hidden, num_classes)),
        "b_lin": 0.1 * jax.random.normal(kbl, (num_classes,), jnp.float32),
    }

    out = gcn_forward(params, x, edge_index, edge_attr, batch, num_graphs=num_graphs)
    out = jax.block_until_ready(out)
    assert out.shape == (num_graphs, num_classes)

    ref = jax.block_until_ready(
        gcn_reference(params, x, edge_index, edge_attr, batch, num_graphs))
    err = float(jnp.max(jnp.abs(out - ref)))
    tol = 5e-2 * (1.0 + float(jnp.max(jnp.abs(ref))))   # bf16 operands, f32 accumulation
    assert err <= tol, f"kernel/reference mismatch: max abs err {err} > tol {tol}"
    return out


if __name__ == "__main__":
    key = jax.random.PRNGKey(0)
    k_small, k_big = jax.random.split(key)

    # Shipped workload: 2 ring graphs of 8 nodes -> padded NP = 128 -> fully fused kernel.
    _run_case(k_small, num_graphs=2, nodes_per_graph=8,
              hidden=32, num_classes=2, num_node_features=1)

    # Larger batch exercising the tiled streaming path (NP = 1536, tm = tk = 512, 3x3 grid).
    _run_case(k_big, num_graphs=3, nodes_per_graph=400,
              hidden=32, num_classes=2, num_node_features=1)

    print("KERNEL_OK")
</pallas_src>

<mosaic_0001>
module attributes {stable_mosaic.version = 11 : i64} {
  func.func @_fused_forward_kernel(%arg0: memref<128x128xbf16, #tpu.memory_space<vmem>>, %arg1: memref<8x128xbf16, #tpu.memory_space<vmem>>, %arg2: memref<128x128xbf16, #tpu.memory_space<vmem>>, %arg3: memref<1x128xf32, #tpu.memory_space<vmem>>, %arg4: memref<128x128xbf16, #tpu.memory_space<vmem>>, %arg5: memref<1x128xf32, #tpu.memory_space<vmem>>, %arg6: memref<128x128xbf16, #tpu.memory_space<vmem>>, %arg7: memref<128x128xf32, #tpu.memory_space<vmem>>, %arg8: memref<1x128xf32, #tpu.memory_space<vmem>>, %arg9: memref<8x128xf32, #tpu.memory_space<vmem>>) attributes {dimension_semantics = [], scalar_prefetch = 0 : i64, scratch_operands = 0 : i64, tpu.core_type = #tpu.core_type<tc>} {
    %c0 = arith.constant 0 : index
    %c0_0 = arith.constant 0 : index
    %0 = vector.load %arg0[%c0, %c0_0] : memref<128x128xbf16, #tpu.memory_space<vmem>>, vector<128x128xbf16>
    %c0_1 = arith.constant 0 : index
    %c0_2 = arith.constant 0 : index
    %1 = vector.load %arg2[%c0_1, %c0_2] : memref<128x128xbf16, #tpu.memory_space<vmem>>, vector<128x128xbf16>
    %cst = arith.constant dense<0.000000e+00> : vector<128x128xf32>
    %2 = tpu.matmul %0, %1, %cst {dimension_numbers = #tpu.dot_dimension_numbers<[1], [0], [0], [1], [0, 0, 1, 1], [], []>} : vector<128x128xbf16>, vector<128x128xbf16>, vector<128x128xf32> -> vector<128x128xf32>
    %c0_3 = arith.constant 0 : index
    %c0_4 = arith.constant 0 : index
    %3 = vector.load %arg3[%c0_3, %c0_4] : memref<1x128xf32, #tpu.memory_space<vmem>>, vector<1x128xf32>
    %4 = vector.broadcast %3 : vector<1x128xf32> to vector<128x128xf32>
    %5 = arith.addf %2, %4 : vector<128x128xf32>
    %cst_5 = arith.constant 0.000000e+00 : f32
    %6 = vector.broadcast %cst_5 : f32 to vector<128x128xf32>
    %7 = arith.maximumf %5, %6 : vector<128x128xf32>
    %8 = arith.truncf %7 : vector<128x128xf32> to vector<128x128xbf16>
    %c0_6 = arith.constant 0 : index
    %c0_7 = arith.constant 0 : index
    %9 = vector.load %arg4[%c0_6, %c0_7] : memref<128x128xbf16, #tpu.memory_space<vmem>>, vector<128x128xbf16>
    %cst_8 = arith.constant dense<0.000000e+00> : vector<128x128xf32>
    %10 = tpu.matmul %8, %9, %cst_8 {dimension_numbers = #tpu.dot_dimension_numbers<[1], [0], [0], [1], [0, 0, 1, 1], [], []>} : vector<128x128xbf16>, vector<128x128xbf16>, vector<128x128xf32> -> vector<128x128xf32>
    %11 = arith.truncf %10 : vector<128x128xf32> to vector<128x128xbf16>
    %cst_9 = arith.constant dense<0.000000e+00> : vector<128x128xf32>
    %12 = tpu.matmul %0, %11, %cst_9 {dimension_numbers = #tpu.dot_dimension_numbers<[1], [0], [0], [1], [0, 0, 1, 1], [], []>} : vector<128x128xbf16>, vector<128x128xbf16>, vector<128x128xf32> -> vector<128x128xf32>
    %c0_10 = arith.constant 0 : index
    %c0_11 = arith.constant 0 : index
    %13 = vector.load %arg5[%c0_10, %c0_11] : memref<1x128xf32, #tpu.memory_space<vmem>>, vector<1x128xf32>
    %14 = vector.broadcast %13 : vector<1x128xf32> to vector<128x128xf32>
    %15 = arith.addf %12, %14 : vector<128x128xf32>
    %cst_12 = arith.constant 0.000000e+00 : f32
    %16 = vector.broadcast %cst_12 : f32 to vector<128x128xf32>
    %17 = arith.maximumf %15, %16 : vector<128x128xf32>
    %18 = arith.truncf %17 : vector<128x128xf32> to vector<128x128xbf16>
    %c0_13 = arith.constant 0 : index
    %c0_14 = arith.constant 0 : index
    %19 = vector.load %arg6[%c0_13, %c0_14] : memref<128x128xbf16, #tpu.memory_space<vmem>>, vector<128x128xbf16>
    %cst_15 = arith.constant dense<0.000000e+00> : vector<128x128xf32>
    %20 = tpu.matmul %18, %19, %cst_15 {dimension_numbers = #tpu.dot_dimension_numbers<[1], [0], [0], [1], [0, 0, 1, 1], [], []>} : vector<128x128xbf16>, vector<128x128xbf16>, vector<128x128xf32> -> vector<128x128xf32>
    %21 = arith.truncf %20 : vector<128x128xf32> to vector<128x128xbf16>
    %c0_16 = arith.constant 0 : index
    %c0_17 = arith.constant 0 : index
    %22 = vector.load %arg1[%c0_16, %c0_17] : memref<8x128xbf16, #tpu.memory_space<vmem>>, vector<8x128xbf16>
    %cst_18 = arith.constant dense<0.000000e+00> : vector<8x128xf32>
    %23 = tpu.matmul %22, %0, %cst_18 {dimension_numbers = #tpu.dot_dimension_numbers<[1], [0], [0], [1], [0, 0, 1, 1], [], []>} : vector<8x128xbf16>, vector<128x128xbf16>, vector<8x128xf32> -> vector<8x128xf32>
    %24 = arith.truncf %23 : vector<8x128xf32> to vector<8x128xbf16>
    %cst_19 = arith.constant dense<0.000000e+00> : vector<8x128xf32>
    %25 = tpu.matmul %24, %21, %cst_19 {dimension_numbers = #tpu.dot_dimension_numbers<[1], [0], [0], [1], [0, 0, 1, 1], [], []>} : vector<8x128xbf16>, vector<128x128xbf16>, vector<8x128xf32> -> vector<8x128xf32>
    %c0_20 = arith.constant 0 : index
    %c0_21 = arith.constant 0 : index
    %26 = vector.load %arg7[%c0_20, %c0_21] : memref<128x128xf32, #tpu.memory_space<vmem>>, vector<128x128xf32>
    %cst_22 = arith.constant dense<0.000000e+00> : vector<8x128xf32>
    %27 = tpu.matmul %25, %26, %cst_22 {dimension_numbers = #tpu.dot_dimension_numbers<[1], [0], [0], [1], [0, 0, 1, 1], [], []>} : vector<8x128xf32>, vector<128x128xf32>, vector<8x128xf32> -> vector<8x128xf32>
    %c0_23 = arith.constant 0 : index
    %c0_24 = arith.constant 0 : index
    %28 = vector.load %arg8[%c0_23, %c0_24] : memref<1x128xf32, #tpu.memory_space<vmem>>, vector<1x128xf32>
    %29 = vector.broadcast %28 : vector<1x128xf32> to vector<8x128xf32>
    %30 = arith.addf %27, %29 : vector<8x128xf32>
    %c0_25 = arith.constant 0 : index
    %c0_26 = arith.constant 0 : index
    %31 = vector.load %arg9[%c0_25, %c0_26] : memref<8x128xf32, #tpu.memory_space<vmem>>, vector<8x128xf32>
    tpu.vector_store %arg9[%c0_25, %c0_26], %30 {strides = array<i32>} : memref<8x128xf32, #tpu.memory_space<vmem>>, vector<8x128xf32>,
    return
  }
}

</mosaic_0001>

<bundles_post_ra>
// kernel: tpu_custom_call.1
= control target key start
LH: loop header
LB: loop body
LE: loop exit
PB: predicated region body
PF: predicated region fallthrough
CT: control target
= control target key end

     0   :  { %14 = vsyncpa [#allocation3], 0  ;;  %s1749_s0 = inlined_call_operand.hbm [shape: bf16[128,128], index: 0, kind: input, shape index: {}]   ;;  %s1750_s1 = inlined_call_operand.hbm [shape: bf16[8,128], index: 1, kind: input, shape index: {}]   ;;  %s1751_s2 = inlined_call_operand.hbm [shape: bf16[128,128], index: 2, kind: input, shape index: {}]   ;;  %s1752_s3 = inlined_call_operand.vmem [shape: f32[1,128], index: 3, kind: input, shape index: {}]   ;;  %s1753_s4 = inlined_call_operand.hbm [shape: bf16[128,128], index: 4, kind: input, shape index: {}]   ;;  %s1754_s5 = inlined_call_operand.vmem [shape: f32[1,128], index: 5, kind: input, shape index: {}]   ;;  %s1755_s6 = inlined_call_operand.hbm [shape: bf16[128,128], index: 6, kind: input, shape index: {}]   ;;  %s1756_s7 = inlined_call_operand.hbm [shape: f32[128,128], index: 7, kind: input, shape index: {}]   ;;  %s1757_s8 = inlined_call_operand.vmem [shape: f32[1,128], index: 8, kind: input, shape index: {}]   ;;  %s1758_s9 = inlined_call_operand.hbm [shape: f32[8,128], index: 9, kind: output, shape index: {}]  }
   0x1   :  { %15 = vsyncpa [#allocation6], 0 }
   0x2   :  { %16 = vsyncpa [#allocation9], 0 }
   0x3   :  { %17 = vsyncpa [#allocation12], 0 }
   0x4   :  { %18 = vsyncpa [#allocation4], 0  ;;  %s1562_s30 = smov [#allocation5]  }
   0x5   :  { %s37_s10 = sshll.u32 %s1562_s30, 4  ;;  %s38_s10 = int_to_ptr.vmem [resolvable:$true] %s37_s10 }
   0x6   :  { %s1420_s11 = scalar_lea.vmem %s38_s10, 64  ;;  %p1425_p1 = scmp.lt.s32.totalorder %s38_s10, %s38_s10 }
   0x7   :  { %p1421_p0 = scmp.ne.s32.totalorder %s38_s10, %s1420_s11  ;;  %p1426_p2 = scmp.lt.s32.totalorder %s1420_s11, %s1420_s11 }
   0x9   :  { %p1427_p3 = por %p1426_p2, %p1425_p1 }
   0xb   :  { %p1428_p4 = pnand %p1427_p3, %p1421_p0 }
   0xd   :  { %1431 = shalt.err (!%p1428_p4)
}
   0xe   :  { %40 = dma.hbm_to_vmem [thread:$0]  %s1750_s1, 64, %s38_s10, [#allocation6]  }
   0xf   :  { %s1563_s14 = smov [#allocation8]   ;;  %s1564_s16 = smov [#allocation2]  }
  0x10   :  { %s60_s15 = sshll.u32 %s1563_s14, 4  ;;  %s24_s17 = sshll.u32 %s1564_s16, 4  ;;  %s61_s15 = int_to_ptr.vmem [resolvable:$true] %s60_s15  ;;  %s25_s17 = int_to_ptr.vmem [resolvable:$true] %s24_s17 }
  0x11   :  { %s1440_s18 = scalar_lea.vmem %s61_s15, 1024  ;;  %p1445_p6 = scmp.lt.s32.totalorder %s61_s15, %s61_s15 }
  0x12   :  { %p1441_p5 = scmp.ne.s32.totalorder %s61_s15, %s1440_s18  ;;  %p1446_p7 = scmp.lt.s32.totalorder %s1440_s18, %s1440_s18 }
  0x14   :  { %p1447_p8 = por %p1446_p7, %p1445_p6 }
  0x16   :  { %p1448_p9 = pnand %p1447_p8, %p1441_p5 }
  0x18   :  { %1451 = shalt.err (!%p1448_p9)
}
  0x19   :  { %s1565_s19 = smov 64   ;;  %s1566_s20 = smov 4  }
  0x1a   :  { %66 = dma.hbm_to_vmem [thread:$0]  %s1753_s4, 1024, %s61_s15, [#allocation9], %s1565_s19, %s1565_s19, %s1566_s20  }
  0x1b   :  { %s1460_s1 = scalar_lea.vmem %s25_s17, 1024  ;;  %p1465_p11 = scmp.lt.s32.totalorder %s25_s17, %s25_s17 }
  0x1c   :  { %p1461_p10 = scmp.ne.s32.totalorder %s25_s17, %s1460_s1  ;;  %p1466_p12 = scmp.lt.s32.totalorder %s1460_s1, %s1460_s1 }
  0x1e   :  { %p1467_p13 = por %p1466_p12, %p1465_p11 }
  0x20   :  { %p1468_p0 = pnand %p1467_p13, %p1461_p10 }
  0x22   :  { %1471 = shalt.err (!%p1468_p0)
}
  0x23   :  { %30 = dma.hbm_to_vmem [thread:$0]  %s1749_s0, 1024, %s25_s17, [#allocation3], %s1565_s19, %s1565_s19, %s1566_s20  }
  0x24   :  { %s1567_s25 = smov [#allocation7]   ;;  %s1568_s27 = smov [#allocation10]  }
  0x25   :  { %s46_s26 = sshll.u32 %s1567_s25, 4  ;;  %s74_s4 = sshll.u32 %s1568_s27, 4  ;;  %s47_s26 = int_to_ptr.vmem [resolvable:$true] %s46_s26  ;;  %s75_s4 = int_to_ptr.vmem [resolvable:$true] %s74_s4 }
  0x26   :  { %s1480_s28 = scalar_lea.vmem %s47_s26, 1024  ;;  %p1485_p2 = scmp.lt.s32.totalorder %s47_s26, %s47_s26 }
  0x27   :  { %p1481_p1 = scmp.ne.s32.totalorder %s47_s26, %s1480_s28  ;;  %p1486_p3 = scmp.lt.s32.totalorder %s1480_s28, %s1480_s28 }
  0x29   :  { %p1487_p4 = por %p1486_p3, %p1485_p2 }
  0x2b   :  { %p1488_p5 = pnand %p1487_p4, %p1481_p1 }
  0x2d   :  { %1491 = shalt.err (!%p1488_p5)
}
  0x2e   :  { %52 = dma.hbm_to_vmem [thread:$0]  %s1751_s2, 1024, %s47_s26, [#allocation6], %s1565_s19, %s1565_s19, %s1566_s20  }
  0x2f   :  { %s1500_s0 = scalar_lea.vmem %s75_s4, 1024  ;;  %p1505_p7 = scmp.lt.s32.totalorder %s75_s4, %s75_s4 }
  0x30   :  { %p1501_p6 = scmp.ne.s32.totalorder %s75_s4, %s1500_s0  ;;  %p1506_p8 = scmp.lt.s32.totalorder %s1500_s0, %s1500_s0 }
  0x32   :  { %p1507_p9 = por %p1506_p8, %p1505_p7 }
  0x34   :  { %p1508_p10 = pnand %p1507_p9, %p1501_p6 }
  0x36   :  { %1511 = shalt.err (!%p1508_p10)
}
  0x37   :  { %80 = dma.hbm_to_vmem [thread:$0]  %s1755_s6, 1024, %s75_s4, [#allocation9], %s1565_s19, %s1565_s19, %s1566_s20  }
  0x38   :  { %s1569_s12 = smov [#allocation11]  }
  0x39   :  { %s86_s13 = sshll.u32 %s1569_s12, 4  ;;  %s87_s13 = int_to_ptr.vmem [resolvable:$true] %s86_s13 }
  0x3a   :  { %s1520_s14 = scalar_lea.vmem %s87_s13, 2048  ;;  %p1525_p12 = scmp.lt.s32.totalorder %s87_s13, %s87_s13 }
  0x3b   :  { %p1521_p11 = scmp.ne.s32.totalorder %s87_s13, %s1520_s14  ;;  %p1526_p13 = scmp.lt.s32.totalorder %s1520_s14, %s1520_s14 }
  0x3d   :  { %p1527_p0 = por %p1526_p13, %p1525_p12 }
  0x3f   :  { %p1528_p1 = pnand %p1527_p0, %p1521_p11 }
  0x41   :  { %1531 = shalt.err (!%p1528_p1)
}
  0x42   :  { %s1570_s2 = smov 128   ;;  %s1571_s15 = smov 8  }
  0x43   :  { %92 = dma.hbm_to_vmem [thread:$0]  %s1756_s7, 2048, %s87_s13, [#allocation12], %s1570_s2, %s1570_s2, %s1571_s15  }
  0x44   :  { %1552 = dma.done.wait [#allocation3], 1024  }
  0x45   :  { %1553 = vsyncadd [#allocation3], 4294966272 }
  0x46   :  { %1554 = dma.done.wait [#allocation6], 1088  }
  0x47   :  { %1555 = vsyncadd [#allocation6], 4294966208 }
  0x48   :  { %1556 = dma.done.wait [#allocation9], 2048  }
  0x49   :  { %1557 = vsyncadd [#allocation9], 4294965248 }
  0x4a   :  { %1558 = dma.done.wait [#allocation12], 2048  }
  0x4b   :  { %1559 = vsyncadd [#allocation12], 4294965248  ;;  %v1380_v0 = vld [vmem:[#allocation7 + $0x38] sm:$0xff]   ;;  %v1381_v1 = vld [vmem:[#allocation7 + $0x30] sm:$0xff]   ;;  %vm1573_vm0 = vmmov 0   ;;  %s1574_s20 = smov [#allocation13]  }
  0x4c   :  { %1164 = vmatprep.subr.bf16.mxu0 %v1380_v0  ;;  %v1382_v2 = vld [vmem:[#allocation7 + $0x28] sm:$0xff]   ;;  %v1383_v3 = vld [vmem:[#allocation7 + $0x20] sm:$0xff]   ;;  %v1384_v5 = vld [vmem:[#allocation7 + $0x18] sm:$0xff]   ;;  %s1018_s21 = sshll.u32 %s1574_s20, 4  ;;  %s1019_s21 = int_to_ptr.vmem [resolvable:$true] %s1018_s21 }
  0x4d   :  { %1165 = vmatpush3.bf16.msra.mxu0 %v1380_v0  ;;  %v1655_v4 = vld [vmem:[#allocation2] sm:$0xff]   ;;  %v1385_v6 = vld [vmem:[#allocation7 + $0x10] sm:$0xff]   ;;  %v1386_v9 = vld [vmem:[#allocation7 + $0x8] sm:$0xff]   ;;  %s1532_s22 = scalar_lea.vmem %s1019_s21, 128  ;;  %p1537_p3 = scmp.lt.s32.totalorder %s1019_s21, %s1019_s21 }
  0x4e   :  { %1166 = vmatprep.subr.bf16.mxu0 %v1381_v1  ;;  %1180 = vmatprep.mubr.bf16.mxu0 %v1655_v4  ;;  %v1396_v7 = vld [vmem:[#allocation8 + $0x38] sm:$0xff]   ;;  %v1397_v8 = vld [vmem:[#allocation8 + $0x30] sm:$0xff]   ;;  %v1398_v10 = vld [vmem:[#allocation8 + $0x28] sm:$0xff]   ;;  %p1533_p2 = scmp.ne.s32.totalorder %s1019_s21, %s1532_s22  ;;  %p1538_p4 = scmp.lt.s32.totalorder %s1532_s22, %s1532_s22 }
  0x4f   :  { %1196 = vmatprep.subr.bf16.mxu1 %v1396_v7  ;;  %v1387_v11 = vld [vmem:[#allocation7] sm:$0xff]   ;;  %v1400_v13 = vld [vmem:[#allocation8 + $0x18] sm:$0xff]   ;;  %v1660_v15 = vld [vmem:[#allocation2 + $0x10] sm:$0xff]  }
  0x50   :  { %1197 = vmatpush3.bf16.msra.mxu1 %v1396_v7  ;;  %v1399_v12 = vld [vmem:[#allocation8 + $0x20] sm:$0xff]   ;;  %v1664_v16 = vld [vmem:[#allocation2 + $0x18] sm:$0xff]   ;;  %v1672_v19 = vld [vmem:[#allocation2 + $0x30] sm:$0xff]   ;;  %p1539_p5 = por %p1538_p4, %p1537_p3 }
  0x51   :  { %1167 = vmatpush3.bf16.msra.mxu0 %v1381_v1  ;;  %1198 = vmatprep.subr.bf16.mxu1 %v1397_v8  ;;  %v1658_v14 = vld [vmem:[#allocation2 + $0x8] sm:$0xff]   ;;  %v1666_v17 = vld [vmem:[#allocation2 + $0x20] sm:$0xff]   ;;  %v1676_v20 = vld [vmem:[#allocation2 + $0x38] sm:$0xff]  }
  0x52   :  { %1168 = vmatprep.subr.bf16.mxu0 %v1382_v2  ;;  %v1670_v18 = vld [vmem:[#allocation2 + $0x28] sm:$0xff]   ;;  %v1401_v21 = vld [vmem:[#allocation8 + $0x10] sm:$0xff]   ;;  %v1030_v26 = vld [vmem:[%s1752_s3] ss:$0 sm:$0xff]  ;;  %p1540_p6 = pnand %p1539_p5, %p1533_p2 }
  0x53   :  { %v1402_v22 = vld [vmem:[#allocation8 + $0x8] sm:$0xff]   ;;  %v1403_v23 = vld [vmem:[#allocation8] sm:$0xff]  }
  0x54   :  { %1199 = vmatpush3.bf16.msra.mxu1 %v1397_v8 }
  0x55   :  { %1169 = vmatpush3.bf16.msra.mxu0 %v1382_v2  ;;  %1200 = vmatprep.subr.bf16.mxu1 %v1398_v10 }
  0x56   :  { %1170 = vmatprep.subr.bf16.mxu0 %v1383_v3 }
  0x58   :  { %1201 = vmatpush3.bf16.msra.mxu1 %v1398_v10 }
  0x59   :  { %1171 = vmatpush3.bf16.msra.mxu0 %v1383_v3  ;;  %1202 = vmatprep.subr.bf16.mxu1 %v1399_v12 }
  0x5a   :  { %1172 = vmatprep.subr.bf16.mxu0 %v1384_v5 }
  0x5c   :  { %1203 = vmatpush3.bf16.msra.mxu1 %v1399_v12 }
  0x5d   :  { %1173 = vmatpush3.bf16.msra.mxu0 %v1384_v5  ;;  %1204 = vmatprep.subr.bf16.mxu1 %v1400_v13 }
  0x5e   :  { %1174 = vmatprep.subr.bf16.mxu0 %v1385_v6 }
  0x60   :  { %1205 = vmatpush3.bf16.msra.mxu1 %v1400_v13 }
  0x61   :  { %1175 = vmatpush3.bf16.msra.mxu0 %v1385_v6  ;;  %1206 = vmatprep.subr.bf16.mxu1 %v1401_v21 }
  0x62   :  { %1176 = vmatprep.subr.bf16.mxu0 %v1386_v9 }
  0x64   :  { %1207 = vmatpush3.bf16.msra.mxu1 %v1401_v21 }
  0x65   :  { %1177 = vmatpush3.bf16.msra.mxu0 %v1386_v9  ;;  %1208 = vmatprep.subr.bf16.mxu1 %v1402_v22 }
  0x66   :  { %1178 = vmatprep.subr.bf16.mxu0 %v1387_v11 }
  0x68   :  { %1209 = vmatpush3.bf16.msra.mxu1 %v1402_v22 }
  0x69   :  { %1179 = vmatpush3.bf16.msra.mxu0 %v1387_v11  ;;  %1210 = vmatprep.subr.bf16.mxu1 %v1403_v23 }
  0x6c   :  { %1181 = vmatmul.mubr.bf16.vlgmr.msra.gmra.mxu0 %v1658_v14  ;;  %1211 = vmatpush3.bf16.msra.mxu1 %v1403_v23 }
  0x6d   :  { %1184 = vmatprep.mubr.bf16.mxu0 %v1660_v15 }
  0x74   :  { %1185 = vmatmul.mubr.bf16.gmra.mxu0 %v1664_v16 }
  0x75   :  { %1188 = vmatprep.mubr.bf16.mxu0 %v1666_v17 }
  0x7c   :  { %1189 = vmatmul.mubr.bf16.gmra.mxu0 %v1670_v18 }
  0x7d   :  { %1192 = vmatprep.mubr.bf16.mxu0 %v1672_v19 }
  0x84   :  { %1193 = vmatmul.mubr.bf16.gmra.mxu0 %v1676_v20 }
  0x85   :  { %1244 = vmatprep.mubr.bf16.mxu0 %v1655_v4 }
 0x12c   :  { %v1182_v24 = vpop.f32.mrf.mxu0 }
 0x12d   :  { %v292_v30 = vadd.f32 %v1182_v24, %v1030_v26 }
 0x12e   :  { %v283_v25 = vpop.f32.mrf.mxu0 }
 0x12f   :  { %v284_v28 = vadd.f32 %v1030_v26, %v283_v25  ;;  %v348_v37 = vmax.f32 %v292_v30, 0.0  ;;  %v1404_v25 = vld [vmem:[#allocation10 + $0x38] sm:$0xff]  }
 0x130   :  { %v1183_v27 = vpop.f32.mrf.mxu0  ;;  %1260 = vmatprep.subr.bf16.mxu1 %v1404_v25 }
 0x131   :  { %v295_v29 = vadd.f32 %v1183_v27, %v1030_v26  ;;  %v346_v35 = vmax.f32 %v284_v28, 0.0  ;;  %v1405_v27 = vld [vmem:[#allocation10 + $0x30] sm:$0xff]   ;;  %v1406_v28 = vld [vmem:[#allocation10 + $0x28] sm:$0xff]  }
 0x132   :  { %v286_v31 = vpop.f32.mrf.mxu0 }
 0x133   :  { %v287_v32 = vadd.f32 %v1030_v26, %v286_v31  ;;  %v349_v33 = vmax.f32 %v295_v29, 0.0  ;;  %v1407_v29 = vld [vmem:[#allocation10 + $0x20] sm:$0xff]  }
 0x134   :  { %v1186_v34 = vpop.f32.mrf.mxu0 }
 0x135   :  { %v347_v36 = vmax.f32 %v287_v32, 0.0  ;;  %v363_v40 = vpack.c.bf16 %v349_v33, %v348_v37  ;;  %v308_v44 = vadd.f32 %v1186_v34, %v1030_v26 }
 0x136   :  { %v299_v38 = vpop.f32.mrf.mxu0 }
 0x137   :  { %v362_v39 = vpack.c.bf16 %v347_v36, %v346_v35  ;;  %v300_v42 = vadd.f32 %v1030_v26, %v299_v38  ;;  %v352_v51 = vmax.f32 %v308_v44, 0.0 }
 0x138   :  { %v1187_v41 = vpop.f32.mrf.mxu0 }
 0x139   :  { %v311_v43 = vadd.f32 %v1187_v41, %v1030_v26  ;;  %1212 = vmatprep.mubr.bf16.mxu1 %v362_v39  ;;  %v350_v49 = vmax.f32 %v300_v42, 0.0 }
 0x13a   :  { %v302_v45 = vpop.f32.mrf.mxu0  ;;  %1213 = vmatmul.mubr.bf16.vlgmr.msra.gmra.mxu1 %v363_v40 }
 0x13b   :  { %v303_v46 = vadd.f32 %v1030_v26, %v302_v45  ;;  %v353_v47 = vmax.f32 %v311_v43, 0.0  ;;  %1261 = vmatpush3.bf16.msra.mxu1 %v1404_v25 }
 0x13c   :  { %v1190_v48 = vpop.f32.mrf.mxu0  ;;  %1262 = vmatprep.subr.bf16.mxu1 %v1405_v27 }
 0x13d   :  { %v351_v50 = vmax.f32 %v303_v46, 0.0  ;;  %v365_v54 = vpack.c.bf16 %v353_v47, %v352_v51  ;;  %v324_v58 = vadd.f32 %v1190_v48, %v1030_v26 }
 0x13e   :  { %v315_v52 = vpop.f32.mrf.mxu0 }
 0x13f   :  { %v364_v53 = vpack.c.bf16 %v351_v50, %v350_v49  ;;  %v316_v56 = vadd.f32 %v1030_v26, %v315_v52  ;;  %v356_v1 = vmax.f32 %v324_v58, 0.0  ;;  %1263 = vmatpush3.bf16.msra.mxu1 %v1405_v27 }
 0x140   :  { %v1191_v55 = vpop.f32.mrf.mxu0  ;;  %1264 = vmatprep.subr.bf16.mxu1 %v1406_v28 }
 0x141   :  { %v327_v57 = vadd.f32 %v1191_v55, %v1030_v26  ;;  %1216 = vmatprep.mubr.bf16.mxu1 %v364_v53  ;;  %v354_v63 = vmax.f32 %v316_v56, 0.0  ;;  %v1410_v55 = vld [vmem:[#allocation10 + $0x8] sm:$0xff]   ;;  %v1411_v56 = vld [vmem:[#allocation10] sm:$0xff]  }
 0x142   :  { %v318_v59 = vpop.f32.mrf.mxu0  ;;  %1217 = vmatmul.mubr.bf16.gmra.mxu1 %v365_v54  ;;  %v1409_v54 = vld [vmem:[#allocation10 + $0x10] sm:$0xff]  }
 0x143   :  { %v319_v60 = vadd.f32 %v1030_v26, %v318_v59  ;;  %v357_v61 = vmax.f32 %v327_v57, 0.0  ;;  %1265 = vmatpush3.bf16.msra.mxu1 %v1406_v28  ;;  %v1572_v57 = vmov 0.0  }
 0x144   :  { %v1194_v62 = vpop.f32.mrf.mxu0  ;;  %1266 = vmatprep.subr.bf16.mxu1 %v1407_v29 }
 0x145   :  { %v355_v0 = vmax.f32 %v319_v60, 0.0  ;;  %v367_v5 = vpack.c.bf16 %v357_v61, %v356_v1  ;;  %v340_v9 = vadd.f32 %v1194_v62, %v1030_v26 }
 0x146   :  { %v331_v2 = vpop.f32.mrf.mxu0 }
 0x147   :  { %v366_v3 = vpack.c.bf16 %v355_v0, %v354_v63  ;;  %v332_v7 = vadd.f32 %v1030_v26, %v331_v2  ;;  %v360_v22 = vmax.f32 %v340_v9, 0.0  ;;  %1267 = vmatpush3.bf16.msra.mxu1 %v1407_v29 }
 0x148   :  { %v1195_v6 = vpop.f32.mrf.mxu0 }
 0x149   :  { %v343_v8 = vadd.f32 %v1195_v6, %v1030_v26  ;;  %1220 = vmatprep.mubr.bf16.mxu1 %v366_v3  ;;  %v358_v13 = vmax.f32 %v332_v7, 0.0 }
 0x14a   :  { %v334_v10 = vpop.f32.mrf.mxu0  ;;  %1221 = vmatmul.mubr.bf16.gmra.mxu1 %v367_v5 }
 0x14b   :  { %v335_v11 = vadd.f32 %v1030_v26, %v334_v10  ;;  %v361_v12 = vmax.f32 %v343_v8, 0.0  ;;  %v1408_v26 = vld [vmem:[#allocation10 + $0x18] sm:$0xff]  }
 0x14c   :  { %1268 = vmatprep.subr.bf16.mxu1 %v1408_v26 }
 0x14d   :  { %v359_v21 = vmax.f32 %v335_v11, 0.0  ;;  %v369_v24 = vpack.c.bf16 %v361_v12, %v360_v22  ;;  %1269 = vmatpush3.bf16.msra.mxu1 %v1408_v26 }
 0x14e   :  { %1270 = vmatprep.subr.bf16.mxu1 %v1409_v54 }
 0x14f   :  { %v368_v23 = vpack.c.bf16 %v359_v21, %v358_v13 }
 0x151   :  { %1224 = vmatprep.mubr.bf16.mxu1 %v368_v23  ;;  %1271 = vmatpush3.bf16.msra.mxu1 %v1409_v54 }
 0x152   :  { %1225 = vmatmul.mubr.bf16.gmra.mxu1 %v369_v24  ;;  %1272 = vmatprep.subr.bf16.mxu1 %v1410_v55 }
 0x155   :  { %1273 = vmatpush3.bf16.msra.mxu1 %v1410_v55 }
 0x156   :  { %1274 = vmatprep.subr.bf16.mxu1 %v1411_v56 }
 0x159   :  { %1275 = vmatpush3.bf16.msra.mxu1 %v1411_v56  ;;  %v933_v56 = vld [vmem:[#allocation11 + $0x78] sm:$0xff] }
 0x15a   :  { %1312 = vmatprep.subr.bf16.mxu1 %v1572_v57 }
 0x1fa   :  { %v1214_v30 = vpop.f32.mrf.mxu1 }
 0x1fc   :  { %v468_v31 = vpop.f32.mrf.mxu1 }
 0x1fe   :  { %v1215_v32 = vpop.f32.mrf.mxu1 }
 0x1ff   :  { %v532_v52 = vpack.c.bf16 %v1215_v32, %v1214_v30 }
 0x200   :  { %v471_v33 = vpop.f32.mrf.mxu1 }
 0x201   :  { %v531_v53 = vpack.c.bf16 %v471_v33, %v468_v31 }
 0x202   :  { %v1218_v34 = vpop.f32.mrf.mxu1 }
 0x204   :  { %v484_v35 = vpop.f32.mrf.mxu1 }
 0x206   :  { %v1219_v36 = vpop.f32.mrf.mxu1 }
 0x207   :  { %v534_v50 = vpack.c.bf16 %v1219_v36, %v1218_v34 }
 0x208   :  { %v487_v37 = vpop.f32.mrf.mxu1 }
 0x209   :  { %v533_v51 = vpack.c.bf16 %v487_v37, %v484_v35 }
 0x20a   :  { %v1222_v38 = vpop.f32.mrf.mxu1 }
 0x20c   :  { %v500_v39 = vpop.f32.mrf.mxu1 }
 0x20e   :  { %v1223_v40 = vpop.f32.mrf.mxu1 }
 0x20f   :  { %v536_v48 = vpack.c.bf16 %v1223_v40, %v1222_v38 }
 0x210   :  { %v503_v41 = vpop.f32.mrf.mxu1 }
 0x211   :  { %v535_v49 = vpack.c.bf16 %v503_v41, %v500_v39 }
 0x212   :  { %v1226_v42 = vpop.f32.mrf.mxu1 }
 0x214   :  { %v516_v43 = vpop.f32.mrf.mxu1 }
 0x216   :  { %v1227_v44 = vpop.f32.mrf.mxu1 }
 0x217   :  { %v538_v45 = vpack.c.bf16 %v1227_v44, %v1226_v42 }
 0x218   :  { %v519_v46 = vpop.f32.mrf.mxu1 }
 0x219   :  { %v537_v47 = vpack.c.bf16 %v519_v46, %v516_v43  ;;  %1228 = vmatprep.subr.bf16.mxu0 %v538_v45 }
 0x21a   :  { %1229 = vmatpush3.bf16.msra.mxu0 %v538_v45 }
 0x21b   :  { %1230 = vmatprep.subr.bf16.mxu0 %v537_v47 }
 0x21e   :  { %1231 = vmatpush3.bf16.msra.mxu0 %v537_v47 }
 0x21f   :  { %1232 = vmatprep.subr.bf16.mxu0 %v536_v48 }
 0x222   :  { %1233 = vmatpush3.bf16.msra.mxu0 %v536_v48 }
 0x223   :  { %1234 = vmatprep.subr.bf16.mxu0 %v535_v49 }
 0x226   :  { %1235 = vmatpush3.bf16.msra.mxu0 %v535_v49 }
 0x227   :  { %1236 = vmatprep.subr.bf16.mxu0 %v534_v50 }
 0x22a   :  { %1237 = vmatpush3.bf16.msra.mxu0 %v534_v50 }
 0x22b   :  { %1238 = vmatprep.subr.bf16.mxu0 %v533_v51 }
 0x22e   :  { %1239 = vmatpush3.bf16.msra.mxu0 %v533_v51 }
 0x22f   :  { %1240 = vmatprep.subr.bf16.mxu0 %v532_v52 }
 0x232   :  { %1241 = vmatpush3.bf16.msra.mxu0 %v532_v52 }
 0x233   :  { %1242 = vmatprep.subr.bf16.mxu0 %v531_v53 }
 0x236   :  { %1243 = vmatpush3.bf16.msra.mxu0 %v531_v53 }
 0x237   :  { %1292 = vmatprep.subr.bf16.mxu0 %v1572_v57 }
 0x239   :  { %1245 = vmatmul.mubr.bf16.vlgmr.msra.gmra.mxu0 %v1658_v14 }
 0x23a   :  { %1248 = vmatprep.mubr.bf16.mxu0 %v1660_v15  ;;  %1293 = vmatpush3.bf16.msra.mxu0 %v1676_v20 }
 0x23b   :  { %1294 = vmatprep.subr.bf16.mxu0 %v1572_v57 }
 0x23e   :  { %1295 = vmatpush3.bf16.msra.mxu0 %v1672_v19 }
 0x23f   :  { %1296 = vmatprep.subr.bf16.mxu0 %v1572_v57 }
 0x241   :  { %1249 = vmatmul.mubr.bf16.gmra.mxu0 %v1664_v16 }
 0x242   :  { %1252 = vmatprep.mubr.bf16.mxu0 %v1666_v17  ;;  %1297 = vmatpush3.bf16.msra.mxu0 %v1670_v18 }
 0x243   :  { %1298 = vmatprep.subr.bf16.mxu0 %v1572_v57 }
 0x246   :  { %1299 = vmatpush3.bf16.msra.mxu0 %v1666_v17 }
 0x247   :  { %1300 = vmatprep.subr.bf16.mxu0 %v1572_v57 }
 0x249   :  { %1253 = vmatmul.mubr.bf16.gmra.mxu0 %v1670_v18  ;;  %v836_v18 = vld [vmem:[#allocation5] sm:$0xf] }
 0x24a   :  { %1256 = vmatprep.mubr.bf16.mxu0 %v1672_v19  ;;  %1301 = vmatpush3.bf16.msra.mxu0 %v1664_v16 }
 0x24b   :  { %1302 = vmatprep.subr.bf16.mxu0 %v1572_v57 }
 0x24e   :  { %1303 = vmatpush3.bf16.msra.mxu0 %v1660_v15  ;;  %v1055_v15 = vld [vmem:[%s1754_s5] ss:$0 sm:$0xff] }
 0x24f   :  { %1304 = vmatprep.subr.bf16.mxu0 %v1572_v57 }
 0x251   :  { %1257 = vmatmul.mubr.bf16.gmra.mxu0 %v1676_v20 }
 0x252   :  { %1308 = vmatprep.mubr.msk.bf16.mxu0 %vm1573_vm0, %v1572_v57  ;;  %1305 = vmatpush3.bf16.msra.mxu0 %v1658_v14 }
 0x253   :  { %1306 = vmatprep.subr.bf16.mxu0 %v1572_v57 }
 0x256   :  { %1307 = vmatpush3.bf16.msra.mxu0 %v1655_v4 }
 0x257   :  { %1332 = vmatprep.subr.mxu0 %v1572_v57 }
 0x259   :  { %1309 = vmatmul.mubr.bf16.vlgmr.msra.gmra.mxu0 %v836_v18  ;;  %v932_v18 = vld [vmem:[#allocation11 + $0x70] sm:$0xff] }
 0x25a   :  { %1364 = vmatprep.mubr.msk.f32.mxu0 %vm1573_vm0, %v1572_v57  ;;  %1333 = vmatpush3.msra.mxu0 %v933_v56 }
 0x25b   :  { %1334 = vmatprep.subr.mxu0 %v1572_v57 }
 0x25c   :  { %1335 = vmatpush3.msra.mxu0 %v932_v18 }
 0x25d   :  { %1336 = vmatprep.subr.mxu0 %v1572_v57 }
 0x2f9   :  { %v1246_v16 = vpop.f32.mrf.mxu0 }
 0x2fa   :  { %v589_v58 = vadd.f32 %v1246_v16, %v1055_v15  ;;  %v931_v16 = vld [vmem:[#allocation11 + $0x68] sm:$0xff] }
 0x2fb   :  { %v580_v17 = vpop.f32.mrf.mxu0  ;;  %1337 = vmatpush3.msra.mxu0 %v931_v16 }
 0x2fc   :  { %v581_v20 = vadd.f32 %v1055_v15, %v580_v17  ;;  %v645_v0 = vmax.f32 %v589_v58, 0.0  ;;  %v930_v17 = vld [vmem:[#allocation11 + $0x60] sm:$0xff]  ;;  %1338 = vmatprep.subr.mxu0 %v1572_v57  ;;  %v925_v58 = vld [vmem:[#allocation11 + $0x38] sm:$0xff] }
 0x2fd   :  { %v1247_v19 = vpop.f32.mrf.mxu0  ;;  %1339 = vmatpush3.msra.mxu0 %v930_v17 }
 0x2fe   :  { %v592_v14 = vadd.f32 %v1247_v19, %v1055_v15  ;;  %v643_v62 = vmax.f32 %v581_v20, 0.0  ;;  %1340 = vmatprep.subr.mxu0 %v1572_v57  ;;  %v928_v19 = vld [vmem:[#allocation11 + $0x50] sm:$0xff]  ;;  %v927_v20 = vld [vmem:[#allocation11 + $0x48] sm:$0xff] }
 0x2ff   :  { %v583_v59 = vpop.f32.mrf.mxu0 }
 0x300   :  { %v584_v60 = vadd.f32 %v1055_v15, %v583_v59  ;;  %v646_v4 = vmax.f32 %v592_v14, 0.0  ;;  %v926_v14 = vld [vmem:[#allocation11 + $0x40] sm:$0xff]  ;;  %v924_v59 = vld [vmem:[#allocation11 + $0x30] sm:$0xff] }
 0x301   :  { %v1250_v61 = vpop.f32.mrf.mxu0 }
 0x302   :  { %v644_v63 = vmax.f32 %v584_v60, 0.0  ;;  %v660_v3 = vpack.c.bf16 %v646_v4, %v645_v0  ;;  %v605_v8 = vadd.f32 %v1250_v61, %v1055_v15  ;;  %v923_v60 = vld [vmem:[#allocation11 + $0x28] sm:$0xff]  ;;  %v922_v4 = vld [vmem:[#allocation11 + $0x20] sm:$0xff]  ;;  %v921_v61 = vld [vmem:[#allocation11 + $0x18] sm:$0xff] }
 0x303   :  { %v596_v1 = vpop.f32.mrf.mxu0 }
 0x304   :  { %v659_v2 = vpack.c.bf16 %v644_v63, %v643_v62  ;;  %v597_v6 = vadd.f32 %v1055_v15, %v596_v1  ;;  %v649_v22 = vmax.f32 %v605_v8, 0.0  ;;  %v920_v62 = vld [vmem:[#allocation11 + $0x10] sm:$0xff]  ;;  %v919_v63 = vld [vmem:[#allocation11 + $0x8] sm:$0xff] }
 0x305   :  { %v1251_v5 = vpop.f32.mrf.mxu0 }
 0x306   :  { %v608_v7 = vadd.f32 %v1251_v5, %v1055_v15  ;;  %1276 = vmatprep.mubr.bf16.mxu1 %v659_v2  ;;  %v647_v13 = vmax.f32 %v597_v6, 0.0 }
 0x307   :  { %v599_v9 = vpop.f32.mrf.mxu0  ;;  %1277 = vmatmul.mubr.bf16.vlgmr.msra.gmra.mxu1 %v660_v3 }
 0x308   :  { %v600_v10 = vadd.f32 %v1055_v15, %v599_v9  ;;  %v650_v11 = vmax.f32 %v608_v7, 0.0 }
 0x309   :  { %v1254_v12 = vpop.f32.mrf.mxu0 }
 0x30a   :  { %v648_v21 = vmax.f32 %v600_v10, 0.0  ;;  %v662_v25 = vpack.c.bf16 %v650_v11, %v649_v22  ;;  %v621_v26 = vadd.f32 %v1254_v12, %v1055_v15 }
 0x30b   :  { %v612_v23 = vpop.f32.mrf.mxu0 }
 0x30c   :  { %v661_v24 = vpack.c.bf16 %v648_v21, %v647_v13  ;;  %v613_v28 = vadd.f32 %v1055_v15, %v612_v23  ;;  %v653_v36 = vmax.f32 %v621_v26, 0.0 }
 0x30d   :  { %v1255_v27 = vpop.f32.mrf.mxu0 }
 0x30e   :  { %v624_v29 = vadd.f32 %v1255_v27, %v1055_v15  ;;  %1280 = vmatprep.mubr.bf16.mxu1 %v661_v24  ;;  %v651_v34 = vmax.f32 %v613_v28, 0.0 }
 0x30f   :  { %v615_v30 = vpop.f32.mrf.mxu0  ;;  %1281 = vmatmul.mubr.bf16.gmra.mxu1 %v662_v25 }
 0x310   :  { %v616_v31 = vadd.f32 %v1055_v15, %v615_v30  ;;  %v654_v32 = vmax.f32 %v624_v29, 0.0 }
 0x311   :  { %v1258_v33 = vpop.f32.mrf.mxu0 }
 0x312   :  { %v652_v35 = vmax.f32 %v616_v31, 0.0  ;;  %v664_v39 = vpack.c.bf16 %v654_v32, %v653_v36  ;;  %v637_v43 = vadd.f32 %v1258_v33, %v1055_v15  ;;  %v918_v33 = vld [vmem:[#allocation11] sm:$0xff] }
 0x313   :  { %v628_v37 = vpop.f32.mrf.mxu0 }
 0x314   :  { %v663_v38 = vpack.c.bf16 %v652_v35, %v651_v34  ;;  %v629_v41 = vadd.f32 %v1055_v15, %v628_v37  ;;  %v657_v49 = vmax.f32 %v637_v43, 0.0 }
 0x315   :  { %v1259_v40 = vpop.f32.mrf.mxu0 }
 0x316   :  { %v640_v42 = vadd.f32 %v1259_v40, %v1055_v15  ;;  %1284 = vmatprep.mubr.bf16.mxu1 %v663_v38  ;;  %v655_v47 = vmax.f32 %v629_v41, 0.0  ;;  %v1064_v38 = vld [vmem:[%s1757_s8] ss:$0 sm:$0xff] }
 0x317   :  { %v631_v44 = vpop.f32.mrf.mxu0  ;;  %1285 = vmatmul.mubr.bf16.gmra.mxu1 %v664_v39 }
 0x318   :  { %v632_v45 = vadd.f32 %v1055_v15, %v631_v44  ;;  %v658_v46 = vmax.f32 %v640_v42, 0.0  ;;  %v929_v15 = vld [vmem:[#allocation11 + $0x58] sm:$0xff] }
 0x319   :  { %v1717_v52 = vpop.f32.mrf.mxu0  ;;  %1341 = vmatpush3.msra.mxu0 %v929_v15 }
 0x31a   :  { %v656_v48 = vmax.f32 %v632_v45, 0.0  ;;  %v666_v51 = vpack.c.bf16 %v658_v46, %v657_v49  ;;  %1342 = vmatprep.subr.mxu0 %v1572_v57  ;;  %v877_v32 = vpack.c.bf16 %v1717_v52, %v1717_v52 }
 0x31b   :  { %v1310_v53 = vpop.f32.mrf.mxu0  ;;  %1343 = vmatpush3.msra.mxu0 %v928_v19 }
 0x31c   :  { %v665_v50 = vpack.c.bf16 %v656_v48, %v655_v47  ;;  %1344 = vmatprep.subr.mxu0 %v1572_v57 }
 0x31d   :  { %v874_v54 = vpop.f32.mrf.mxu0  ;;  %1345 = vmatpush3.msra.mxu0 %v927_v20 }
 0x31e   :  { %1288 = vmatprep.mubr.bf16.mxu1 %v665_v50  ;;  %1346 = vmatprep.subr.mxu0 %v1572_v57 }
 0x31f   :  { %1289 = vmatmul.mubr.bf16.gmra.mxu1 %v666_v51  ;;  %v1311_v55 = vpop.f32.mrf.mxu0  ;;  %1347 = vmatpush3.msra.mxu0 %v926_v14 }
 0x320   :  { %1328 = vmatprep.mubr.msk.bf16.mxu1 %vm1573_vm0, %v1572_v57  ;;  %1348 = vmatprep.subr.mxu0 %v1572_v57 }
 0x321   :  { %1349 = vmatpush3.msra.mxu0 %v925_v58 }
 0x322   :  { %1350 = vmatprep.subr.mxu0 %v1572_v57 }
 0x323   :  { %1351 = vmatpush3.msra.mxu0 %v924_v59 }
 0x324   :  { %1352 = vmatprep.subr.mxu0 %v1572_v57 }
 0x325   :  { %1353 = vmatpush3.msra.mxu0 %v923_v60 }
 0x326   :  { %1354 = vmatprep.subr.mxu0 %v1572_v57 }
 0x327   :  { %1355 = vmatpush3.msra.mxu0 %v922_v4 }
 0x328   :  { %1356 = vmatprep.subr.mxu0 %v1572_v57 }
 0x329   :  { %1357 = vmatpush3.msra.mxu0 %v921_v61 }
 0x32a   :  { %1358 = vmatprep.subr.mxu0 %v1572_v57 }
 0x32b   :  { %1359 = vmatpush3.msra.mxu0 %v920_v62 }
 0x32c   :  { %1360 = vmatprep.subr.mxu0 %v1572_v57 }
 0x32d   :  { %1361 = vmatpush3.msra.mxu0 %v919_v63 }
 0x32e   :  { %1362 = vmatprep.subr.mxu0 %v1572_v57 }
 0x32f   :  { %1363 = vmatpush3.msra.mxu0 %v918_v33 }
 0x3c7   :  { %v1278_v0 = vpop.f32.mrf.mxu1 }
 0x3c9   :  { %v765_v1 = vpop.f32.mrf.mxu1 }
 0x3cb   :  { %v1279_v2 = vpop.f32.mrf.mxu1 }
 0x3cc   :  { %v829_v30 = vpack.c.bf16 %v1279_v2, %v1278_v0 }
 0x3cd   :  { %v768_v3 = vpop.f32.mrf.mxu1 }
 0x3ce   :  { %v828_v31 = vpack.c.bf16 %v768_v3, %v765_v1 }
 0x3cf   :  { %v1282_v5 = vpop.f32.mrf.mxu1 }
 0x3d1   :  { %v781_v6 = vpop.f32.mrf.mxu1 }
 0x3d3   :  { %v1283_v7 = vpop.f32.mrf.mxu1 }
 0x3d4   :  { %v831_v29 = vpack.c.bf16 %v1283_v7, %v1282_v5 }
 0x3d5   :  { %v784_v8 = vpop.f32.mrf.mxu1 }
 0x3d6   :  { %v830_v26 = vpack.c.bf16 %v784_v8, %v781_v6 }
 0x3d7   :  { %v1286_v9 = vpop.f32.mrf.mxu1 }
 0x3d9   :  { %v797_v10 = vpop.f32.mrf.mxu1 }
 0x3db   :  { %v1287_v11 = vpop.f32.mrf.mxu1 }
 0x3dc   :  { %v833_v27 = vpack.c.bf16 %v1287_v11, %v1286_v9 }
 0x3dd   :  { %v800_v12 = vpop.f32.mrf.mxu1 }
 0x3de   :  { %v832_v28 = vpack.c.bf16 %v800_v12, %v797_v10 }
 0x3df   :  { %v1290_v13 = vpop.f32.mrf.mxu1 }
 0x3e1   :  { %v813_v21 = vpop.f32.mrf.mxu1 }
 0x3e3   :  { %v1291_v22 = vpop.f32.mrf.mxu1 }
 0x3e4   :  { %v835_v23 = vpack.c.bf16 %v1291_v22, %v1290_v13 }
 0x3e5   :  { %v816_v24 = vpop.f32.mrf.mxu1 }
 0x3e6   :  { %1313 = vmatpush3.bf16.msra.mxu1 %v835_v23  ;;  %v834_v25 = vpack.c.bf16 %v816_v24, %v813_v21 }
 0x3e7   :  { %1314 = vmatprep.subr.bf16.mxu1 %v1572_v57 }
 0x3ea   :  { %1315 = vmatpush3.bf16.msra.mxu1 %v834_v25 }
 0x3eb   :  { %1316 = vmatprep.subr.bf16.mxu1 %v1572_v57 }
 0x3ee   :  { %1317 = vmatpush3.bf16.msra.mxu1 %v833_v27 }
 0x3ef   :  { %1318 = vmatprep.subr.bf16.mxu1 %v1572_v57 }
 0x3f2   :  { %1319 = vmatpush3.bf16.msra.mxu1 %v832_v28 }
 0x3f3   :  { %1320 = vmatprep.subr.bf16.mxu1 %v1572_v57 }
 0x3f6   :  { %1321 = vmatpush3.bf16.msra.mxu1 %v831_v29 }
 0x3f7   :  { %1322 = vmatprep.subr.bf16.mxu1 %v1572_v57 }
 0x3fa   :  { %1323 = vmatpush3.bf16.msra.mxu1 %v830_v26 }
 0x3fb   :  { %1324 = vmatprep.subr.bf16.mxu1 %v1572_v57 }
 0x3fe   :  { %1325 = vmatpush3.bf16.msra.mxu1 %v829_v30 }
 0x3ff   :  { %1326 = vmatprep.subr.bf16.mxu1 %v1572_v57 }
 0x402   :  { %1327 = vmatpush3.bf16.msra.mxu1 %v828_v31 }
 0x405   :  { %1329 = vmatmul.mubr.bf16.vlgmr.msra.gmra.mxu1 %v877_v32 }
 0x4c5   :  { %v912_v34 = vpop.f32.mrf.mxu1 }
 0x4c6   :  { %1365 = vmatmul.mubr.f32.vlgmr.msra.gmra.mxu0 %v912_v34 }
 0x4c7   :  { %v1330_v35 = vpop.f32.mrf.mxu1 }
 0x4c9   :  { %v915_v36 = vpop.f32.mrf.mxu1 }
 0x4cb   :  { %v1331_v37 = vpop.f32.mrf.mxu1 }
 0x586   :  { %v1007_v57 = vpop.f32.mrf.mxu0 }
 0x587   :  { %v1008_v39 = vadd.f32 %v1064_v38, %v1007_v57 }
 0x588   :  { %v1366_v40 = vpop.f32.mrf.mxu0 }
 0x589   :  { %1011 = vst [vmem:[#allocation13] sm:$0xff] %v1008_v39 }
 0x58a   :  { %1543 = shalt.err (!%p1540_p6)
}
 0x58b   :  { %1021 = dma.vmem_to_hbm [thread:$0]  %s1019_s21, 128, %s1758_s9, [#allocation4]  }
 0x58c   :  { %1560 = dma.done.wait [#allocation4], 128  }
 0x58d   :  { %1561 = vsyncadd [#allocation4], 4294967168 }
 0x58e   :  { %1025 = vsyncpa [#allocation3], 1 }
 0x58f   :  { %1026 = vsyncpa [#allocation6], 1 }
 0x590   :  { %1027 = vsyncpa [#allocation9], 1 }
 0x591   :  { %1028 = vsyncpa [#allocation12], 1 }
 0x592   :  { %1029 = vsyncpa [#allocation4], 1 }

</bundles_post_ra>
